<compile_context>
chip_gen: v6e
topology: v6e:2x2x1
jax: 0.10.0
libtpu: 0.0.40
codegen_flags: <defaults>
</compile_context>

<pallas_src>
import jax
import jax.numpy as jnp
from jax.experimental import pallas as pl
from jax.experimental.pallas import tpu as pltpu


def sentiment_kernel(x_ref, wt_ref, b_ref, o_ref):
    # x: (tm, M), wt: (M, C)  (already transposed), b: (1, C) -> o: (tm, C)
    x = x_ref[...]
    wt = wt_ref[...]
    b = b_ref[...]

    # Linear: x @ W^T + b, with W^T supplied pre-transposed -> direct MXU issue.
    logits = jnp.dot(x, wt, preferred_element_type=jnp.float32) + b

    # LogSoftmax along the class axis (numerically stable), all-f32 epilogue.
    m = jnp.max(logits, axis=-1, keepdims=True)
    shifted = logits - m
    lse = jnp.log(jnp.sum(jnp.exp(shifted), axis=-1, keepdims=True))
    o_ref[...] = (shifted - lse).astype(o_ref.dtype)


def sentiment_forward(vec, weight, bias, *, batch_tile=512):
    """vec: (B, mem_dim), weight: (num_classes, mem_dim), bias: (num_classes,)."""
    B, M = vec.shape
    C, _ = weight.shape

    # Layout plumbing outside the kernel: (C, M) -> (M, C), bias -> (1, C).
    w_t = jnp.transpose(weight)
    b2d = bias.reshape(1, C)

    if B <= batch_tile or B % batch_tile != 0:
        # Single-tile kernel: no grid, no per-step pipeline bookkeeping.
        return pl.pallas_call(
            sentiment_kernel,
            out_shape=jax.ShapeDtypeStruct((B, C), vec.dtype),
            in_specs=[
                pl.BlockSpec(memory_space=pltpu.MemorySpace.VMEM),
                pl.BlockSpec(memory_space=pltpu.MemorySpace.VMEM),
                pl.BlockSpec(memory_space=pltpu.MemorySpace.VMEM),
            ],
            out_specs=pl.BlockSpec(memory_space=pltpu.MemorySpace.VMEM),
        )(vec, w_t, b2d)

    # Batched path: tile the batch axis; "parallel" lets the two v7x TCs split it.
    # (batch_tile, M) f32 blocks stay far under the v7x 32 MiB scoped-VMEM default.
    return pl.pallas_call(
        sentiment_kernel,
        out_shape=jax.ShapeDtypeStruct((B, C), vec.dtype),
        grid_spec=pl.GridSpec(
            grid=(B // batch_tile,),
            in_specs=[
                pl.BlockSpec((batch_tile, M), lambda i: (i, 0)),
                pl.BlockSpec((M, C), lambda i: (0, 0)),
                pl.BlockSpec((1, C), lambda i: (0, 0)),
            ],
            out_specs=pl.BlockSpec((batch_tile, C), lambda i: (i, 0)),
        ),
        compiler_params=pltpu.CompilerParams(
            dimension_semantics=("parallel",)),
    )(vec, w_t, b2d)


def reference_forward(vec, weight, bias):
    logits = vec @ weight.T + bias
    return jax.nn.log_softmax(logits, axis=-1)


if __name__ == "__main__":
    # Small shapes consistent with the module: batch=8, mem_dim=32, num_classes=3.
    batch, mem_dim, num_classes = 8, 32, 3

    key = jax.random.PRNGKey(0)
    k_x, k_w, k_b, k_xl = jax.random.split(key, 4)

    vec = jax.random.normal(k_x, (batch, mem_dim), dtype=jnp.float32)

    # Deterministic parameter init (PyTorch Linear-style uniform bound).
    bound = 1.0 / (mem_dim ** 0.5)
    weight = jax.random.uniform(k_w, (num_classes, mem_dim),
                                minval=-bound, maxval=bound, dtype=jnp.float32)
    bias = jax.random.uniform(k_b, (num_classes,),
                              minval=-bound, maxval=bound, dtype=jnp.float32)

    # 1) Small-batch, single-tile path.
    out = sentiment_forward(vec, weight, bias)
    out = jax.block_until_ready(out)
    ref = reference_forward(vec, weight, bias)
    assert out.shape == (batch, num_classes)
    assert jnp.allclose(out, ref, atol=1e-5, rtol=1e-5)

    # 2) Large-batch, batch-tiled ("parallel") path.
    big_batch = 1024
    vec_big = jax.random.normal(k_xl, (big_batch, mem_dim), dtype=jnp.float32)
    out_big = sentiment_forward(vec_big, weight, bias)
    out_big = jax.block_until_ready(out_big)
    ref_big = reference_forward(vec_big, weight, bias)
    assert out_big.shape == (big_batch, num_classes)
    assert jnp.allclose(out_big, ref_big, atol=1e-5, rtol=1e-5)

    print("KERNEL_OK")
</pallas_src>

<mosaic_0001>
module attributes {stable_mosaic.version = 11 : i64} {
  func.func @sentiment_kernel(%arg0: memref<8x32xf32, #tpu.memory_space<vmem>>, %arg1: memref<32x3xf32, #tpu.memory_space<vmem>>, %arg2: memref<1x3xf32, #tpu.memory_space<vmem>>, %arg3: memref<8x3xf32, #tpu.memory_space<vmem>>) attributes {dimension_semantics = [], scalar_prefetch = 0 : i64, scratch_operands = 0 : i64, tpu.core_type = #tpu.core_type<tc>} {
    %c0 = arith.constant 0 : index
    %c0_0 = arith.constant 0 : index
    %0 = vector.load %arg0[%c0, %c0_0] : memref<8x32xf32, #tpu.memory_space<vmem>>, vector<8x32xf32>
    %c0_1 = arith.constant 0 : index
    %c0_2 = arith.constant 0 : index
    %1 = vector.load %arg1[%c0_1, %c0_2] : memref<32x3xf32, #tpu.memory_space<vmem>>, vector<32x3xf32>
    %c0_3 = arith.constant 0 : index
    %c0_4 = arith.constant 0 : index
    %2 = vector.load %arg2[%c0_3, %c0_4] : memref<1x3xf32, #tpu.memory_space<vmem>>, vector<1x3xf32>
    %cst = arith.constant dense<0.000000e+00> : vector<8x3xf32>
    %3 = tpu.matmul %0, %1, %cst {dimension_numbers = #tpu.dot_dimension_numbers<[1], [0], [0], [1], [0, 0, 1, 1], [], []>} : vector<8x32xf32>, vector<32x3xf32>, vector<8x3xf32> -> vector<8x3xf32>
    %4 = vector.broadcast %2 : vector<1x3xf32> to vector<8x3xf32>
    %5 = arith.addf %3, %4 : vector<8x3xf32>
    %cst_5 = arith.constant dense<0xFF800000> : vector<8xf32>
    %6 = vector.multi_reduction <maximumf>, %5, %cst_5 [1] : vector<8x3xf32> to vector<8xf32>
    %7 = vector.shape_cast %6 : vector<8xf32> to vector<8x1xf32>
    %8 = vector.broadcast %7 : vector<8x1xf32> to vector<8x3xf32>
    %9 = arith.subf %5, %8 : vector<8x3xf32>
    %10 = math.exp %9 : vector<8x3xf32>
    %cst_6 = arith.constant dense<0.000000e+00> : vector<8xf32>
    %11 = vector.multi_reduction <add>, %10, %cst_6 [1] : vector<8x3xf32> to vector<8xf32>
    %12 = vector.shape_cast %11 : vector<8xf32> to vector<8x1xf32>
    %13 = math.log %12 : vector<8x1xf32>
    %14 = vector.broadcast %13 : vector<8x1xf32> to vector<8x3xf32>
    %15 = arith.subf %9, %14 : vector<8x3xf32>
    %c0_7 = arith.constant 0 : index
    %c0_8 = arith.constant 0 : index
    %16 = vector.load %arg3[%c0_7, %c0_8] : memref<8x3xf32, #tpu.memory_space<vmem>>, vector<8x3xf32>
    tpu.vector_store %arg3[%c0_7, %c0_8], %15 {strides = array<i32>} : memref<8x3xf32, #tpu.memory_space<vmem>>, vector<8x3xf32>,
    return
  }
}

</mosaic_0001>

<bundles_post_ra>
// kernel: tpu_custom_call.1
= control target key start
LH: loop header
LB: loop body
LE: loop exit
PB: predicated region body
PF: predicated region fallthrough
CT: control target
= control target key end

     0   :  { %v142_v0 = vmov 0.0   ;;  %vm143_vm0 = vmmov 0   ;;  %vm26_vm1 = vcmask 261120   ;;  %vm100_vm2 = vcmask 23552   ;;  %s188_s1 = inlined_call_operand.vmem [shape: f32[32,3], index: 1, kind: input, shape index: {}]   ;;  %s189_s0 = inlined_call_operand.vmem [shape: f32[8,32], index: 0, kind: input, shape index: {}]   ;;  %s190_s2 = inlined_call_operand.vmem [shape: f32[1,3], index: 2, kind: input, shape index: {}]   ;;  %s191_s3 = inlined_call_operand.vmem [shape: f32[8,3], index: 3, kind: output, shape index: {}]  }
   0x1   :  { %125 = vmatprep.subr.mxu0 %v142_v0  ;;  %v18_v1 = vld [vmem:[%s188_s1 + $0x18] sm:$0xff]  ;;  %v17_v2 = vld [vmem:[%s188_s1 + $0x10] sm:$0xff]  ;;  %133 = vmatprep.mubr.msk.f32.mxu0 %vm143_vm0, %v142_v0  ;;  %v16_v3 = vld [vmem:[%s188_s1 + $0x8] sm:$0xff] }
   0x2   :  { %126 = vmatpush3.msra.mxu0 %v18_v1  ;;  %v15_v4 = vld [vmem:[%s188_s1] sm:$0xff] }
   0x3   :  { %127 = vmatprep.subr.mxu0 %v142_v0  ;;  %v14_v5 = vld [vmem:[%s189_s0] sm:$0xff] }
   0x4   :  { %128 = vmatpush3.msra.mxu0 %v17_v2  ;;  %v118_v6 = vld [vmem:[%s190_s2] ss:$0 sm:$0xff] }
   0x5   :  { %129 = vmatprep.subr.mxu0 %v142_v0 }
   0x6   :  { %130 = vmatpush3.msra.mxu0 %v16_v3 }
   0x7   :  { %131 = vmatprep.subr.mxu0 %v142_v0 }
   0x8   :  { %132 = vmatpush3.msra.mxu0 %v15_v4 }
   0x9   :  { %134 = vmatmul.mubr.msk.f32.vlgmr.msra.gmra.mxu0 %vm26_vm1, %v14_v5 }
  0xc9   :  { %v96_v7 = vpop.f32.mrf.mxu0 }
  0xca   :  { %v97_v8 = vadd.f32 %v118_v6, %v96_v7 }
  0xcb   :  { %v135_v9 = vpop.f32.mrf.mxu0 }
  0xcc   :  { %v101_v10 = vsel %vm100_vm2, %v97_v8, -inf }
  0xcd   :  { %102 = vmax.xlane.f32.xlu0 %v101_v10 }
 0x156   :  { %v103_v11 = vpop.xlane.xlu0 %102 }
 0x157   :  { %v104_v12 = vsub.f32 %v97_v8, %v103_v11 }
 0x159   :  { %v105_v13 = vmul.f32 1.442695, %v104_v12 }
 0x15b   :  { %138 = vpow2.f32 %v105_v13 }
 0x168   :  { %v139_v14 = vpop.eup %138 }
 0x169   :  { %v107_v15 = vsel %vm100_vm2, %v139_v14, 0.0 }
 0x16a   :  { %108 = vadd.xlane.f32.xlu0 %v107_v15 }
 0x1f3   :  { %v109_v16 = vpop.xlane.xlu0 %108 }
 0x1f4   :  { %140 = vlog2.f32 %v109_v16 }
 0x201   :  { %v141_v17 = vpop.eup %140 }
 0x202   :  { %v111_v18 = vmul.f32 0.6931472, %v141_v17 }
 0x204   :  { %v112_v19 = vsub.f32 %v104_v12, %v111_v18 }
 0x206   :  { %113 = vst.msk [vmem:[%s191_s3] sm:$0xff] %vm100_vm2, %v112_v19 }

</bundles_post_ra>
